<compile_context>
chip_gen: v6e
topology: v6e:2x2x1
jax: 0.10.0
libtpu: 0.0.40
codegen_flags: <defaults>
</compile_context>

<pallas_src>
import functools
from typing import NamedTuple

import jax
import jax.numpy as jnp
from jax import lax
from jax.experimental import pallas as pl
from jax.experimental.pallas import tpu as pltpu

LEAKY_SLOPE = 0.01   # nn.LeakyReLU default
LN_EPS = 1e-5        # nn.LayerNorm default


# ----------------------------------------------------------------------------
# small math helpers (shared by kernels and the pure-JAX reference)
# ----------------------------------------------------------------------------
def _leaky_relu(x):
    return jnp.where(x > 0, x, LEAKY_SLOPE * x)


def _layer_norm(x, gamma, beta):
    # x: (N, H); gamma/beta: (1, H)
    mean = jnp.mean(x, axis=-1, keepdims=True)
    var = jnp.mean((x - mean) ** 2, axis=-1, keepdims=True)
    xhat = (x - mean) * lax.rsqrt(var + LN_EPS)
    return xhat * gamma + beta


def _round_up(a, b):
    return ((a + b - 1) // b) * b


def _fc1_partial(x_blk, w1_blk, w1_transposed):
    # x_blk: (Np, tk) bf16.  w1_blk: (H, tk) bf16 (transposed) or (tk, H) bf16.
    if w1_transposed:
        return lax.dot_general(
            x_blk, w1_blk,
            dimension_numbers=(((1,), (1,)), ((), ())),
            preferred_element_type=jnp.float32)
    return jnp.dot(x_blk, w1_blk, preferred_element_type=jnp.float32)


def _epilogue_math(h1, b1, g1, be1, w2, b2, g2, be2, w3, b3):
    # bias + LN1 + LeakyReLU + fc2 + LN2 + LeakyReLU + fc3 (dropout = identity)
    h1 = h1 + b1
    h1 = _leaky_relu(_layer_norm(h1, g1, be1))
    h2 = jnp.dot(h1, w2, preferred_element_type=jnp.float32) + b2
    h2 = _leaky_relu(_layer_norm(h2, g2, be2))
    return jnp.dot(h2, w3, preferred_element_type=jnp.float32) + b3


# ----------------------------------------------------------------------------
# kernels
# ----------------------------------------------------------------------------
def make_fused_head_kernel(w1_transposed):
    """Single-call path (1 TensorCore): K-streaming fc1 + fused epilogue."""

    def fused_head_kernel(x_ref, w1_ref, b1_ref, g1_ref, be1_ref,
                          w2_ref, b2_ref, g2_ref, be2_ref, w3_ref, b3_ref,
                          out_ref, acc_ref):
        k = pl.program_id(0)

        @pl.when(k == 0)
        def _():
            acc_ref[...] = jnp.zeros_like(acc_ref)

        acc_ref[...] += _fc1_partial(x_ref[...], w1_ref[...], w1_transposed)

        @pl.when(k == pl.num_programs(0) - 1)
        def _():
            out = _epilogue_math(
                acc_ref[...], b1_ref[...], g1_ref[...], be1_ref[...],
                w2_ref[...], b2_ref[...], g2_ref[...], be2_ref[...],
                w3_ref[...], b3_ref[...])
            out_ref[...] = out.astype(out_ref.dtype)

    return fused_head_kernel


def make_fc1_partial_kernel(w1_transposed):
    """Stage 1 of the split path: per-core partial fc1 sums."""

    def fc1_partial_kernel(x_ref, w1_ref, part_ref):
        @pl.when(pl.program_id(1) == 0)
        def _():
            part_ref[...] = jnp.zeros_like(part_ref)

        part_ref[...] += _fc1_partial(x_ref[...], w1_ref[...],
                                      w1_transposed)[None]

    return fc1_partial_kernel


def combine_epilogue_kernel(part_ref, b1_ref, g1_ref, be1_ref,
                            w2_ref, b2_ref, g2_ref, be2_ref, w3_ref, b3_ref,
                            out_ref):
    """Stage 2 of the split path: sum per-core partials + fused epilogue."""
    h1 = jnp.sum(part_ref[...], axis=0)
    out = _epilogue_math(
        h1, b1_ref[...], g1_ref[...], be1_ref[...],
        w2_ref[...], b2_ref[...], g2_ref[...], be2_ref[...],
        w3_ref[...], b3_ref[...])
    out_ref[...] = out.astype(out_ref.dtype)


# ----------------------------------------------------------------------------
# configuration (generation-aware, computed once in prepare_params)
# ----------------------------------------------------------------------------
class HeadConfig(NamedTuple):
    F: int              # flattened backbone feature size
    H: int              # hidden_size
    F_pad: int          # F padded to n_split * n_k_per * tk
    tk: int             # contraction tile
    n_k_per: int        # K blocks per split
    n_split: int        # TensorCore split of the K reduction (v7x: 2)
    w1_transposed: bool  # True -> w1 stored (H, F_pad); False -> (F_pad, H)
    vmem_limit: int


def _vmem_capacity_bytes():
    try:
        info = pltpu.get_tpu_info()
        cap = int(getattr(info, "vmem_capacity_bytes", 0))
        if cap > 0:
            return cap
    except Exception:
        pass
    return 128 << 20


def _default_n_split():
    # v7x has 2 TensorCores per chip -> split the fc1 K reduction across them.
    # v5e / v6e have 1 TC -> keep the fused single-call kernel.
    try:
        kind = jax.devices()[0].device_kind.lower()
    except Exception:
        return 1
    return 2 if "v7" in kind else 1


def _derive_config(F, H, *, tk, n_split, batch_hint):
    n_pad = _round_up(max(batch_hint, 1), 16)
    # Natural (F, H) layout is both lane-dense and MXU-natural when H is a
    # multiple of 128; otherwise stream w1 transposed (H, F) so the big F axis
    # is lane-dense.
    w1_transposed = not (H >= 128 and H % 128 == 0)

    vmem_cap = _vmem_capacity_bytes()
    # Slab budget: ~96 MiB on v5e/v6e (128 MiB VMEM), ~40 MiB on v7x (64 MiB).
    budget = max(min(vmem_cap - (24 << 20), 96 << 20), 24 << 20)

    share = -(-F // n_split)                       # K range per split
    tk_eff = min(_round_up(tk, 128), _round_up(share, 128))
    tk_eff = max(tk_eff, 128)

    h8 = _round_up(H, 8)
    h128 = _round_up(H, 128)

    def need(t):
        x_slabs = 2 * n_pad * t * 2                       # bf16, double-buffered
        w_slabs = 2 * (h8 * t if w1_transposed else t * h128) * 2
        acc = 2 * n_pad * h128 * 4                        # accumulator / partial
        consts = 2 * 4 * (h8 * h128 + 8 * 8 * h128)       # w2 + small vectors, 2x
        return x_slabs + w_slabs + acc + consts + (2 << 20)

    while need(tk_eff) > budget and tk_eff > 512:
        tk_eff = max(512, _round_up(tk_eff // 2, 128))

    n_k_per = -(-share // tk_eff)
    f_pad = n_split * n_k_per * tk_eff
    # vmem_limit tracks the actual requirement (exceeding it fails compilation,
    # it does NOT silently re-tile), with headroom below physical capacity.
    vmem_limit = int(min(max(need(tk_eff) + (8 << 20), 32 << 20),
                         vmem_cap - (8 << 20)))
    return HeadConfig(F=F, H=H, F_pad=f_pad, tk=tk_eff, n_k_per=n_k_per,
                      n_split=n_split, w1_transposed=w1_transposed,
                      vmem_limit=vmem_limit)


def prepare_params(params, *, tk=8192, n_split=None, batch_hint=16):
    """One-time parameter preparation (hoisted out of the per-call path).

    Casts w1 to bf16, lays it out lane-dense for the K-streaming kernel and
    zero-pads it to the tile grid.  Returns (prepared_arrays, static_config).
    """
    F, H = params["w1"].shape
    if n_split is None:
        n_split = _default_n_split()
    cfg = _derive_config(F, H, tk=tk, n_split=n_split, batch_hint=batch_hint)

    w1 = params["w1"].astype(jnp.bfloat16)
    if cfg.w1_transposed:
        w1p = jnp.pad(w1.T, ((0, 0), (0, cfg.F_pad - F)))    # (H, F_pad)
    else:
        w1p = jnp.pad(w1, ((0, cfg.F_pad - F), (0, 0)))       # (F_pad, H)

    prep = {
        "w1p": w1p,
        "b1": params["b1"].astype(jnp.float32).reshape(1, H),
        "g1": params["g1"].astype(jnp.float32).reshape(1, H),
        "be1": params["be1"].astype(jnp.float32).reshape(1, H),
        "w2": params["w2"].astype(jnp.float32),
        "b2": params["b2"].astype(jnp.float32).reshape(1, H),
        "g2": params["g2"].astype(jnp.float32).reshape(1, H),
        "be2": params["be2"].astype(jnp.float32).reshape(1, H),
        "w3": params["w3"].astype(jnp.float32),
        "b3": params["b3"].astype(jnp.float32).reshape(1, 1),
    }
    return prep, cfg


# ----------------------------------------------------------------------------
# forward
# ----------------------------------------------------------------------------
def _full_spec(shape):
    return pl.BlockSpec(shape, lambda *_: (0,) * len(shape))


@functools.partial(jax.jit, static_argnames=("cfg",))
def visualbert_head(last_hidden_state, prep, cfg: HeadConfig):
    """last_hidden_state: (N, SEQ, BERT_H) -> fc3 output (N, 1)."""
    N = last_hidden_state.shape[0]
    x = last_hidden_state.reshape(N, -1)
    F, H = cfg.F, cfg.H
    assert x.shape[1] == F

    N_pad = _round_up(max(N, 1), 16)      # bf16 vregs pack [16, 128]
    x_bf = jnp.pad(x.astype(jnp.bfloat16),
                   ((0, N_pad - N), (0, cfg.F_pad - F)))

    const_args = (prep["b1"], prep["g1"], prep["be1"], prep["w2"], prep["b2"],
                  prep["g2"], prep["be2"], prep["w3"], prep["b3"])
    const_specs = [
        _full_spec((1, H)), _full_spec((1, H)), _full_spec((1, H)),
        _full_spec((H, H)), _full_spec((1, H)), _full_spec((1, H)),
        _full_spec((1, H)), _full_spec((H, 1)), _full_spec((1, 1)),
    ]

    n_k_per = cfg.n_k_per
    fc1_flops = 2 * N_pad * cfg.F_pad * H
    fc1_bytes = N_pad * cfg.F_pad * 2 + H * cfg.F_pad * 2

    if cfg.n_split == 1:
        # -------- fused single-call path (v5e / v6e, 1 TensorCore) --------
        if cfg.w1_transposed:
            w1_spec = pl.BlockSpec((H, cfg.tk), lambda k: (0, k))
        else:
            w1_spec = pl.BlockSpec((cfg.tk, H), lambda k: (k, 0))

        cost = pl.CostEstimate(
            flops=int(fc1_flops + 2 * N_pad * H * H + 2 * N_pad * H),
            transcendentals=int(2 * N_pad),
            bytes_accessed=int(fc1_bytes + (H * H + 7 * H + 2) * 4 + N_pad * 4))

        out = pl.pallas_call(
            make_fused_head_kernel(cfg.w1_transposed),
            out_shape=jax.ShapeDtypeStruct((N_pad, 1), jnp.float32),
            grid_spec=pltpu.PrefetchScalarGridSpec(
                num_scalar_prefetch=0,
                grid=(n_k_per,),
                in_specs=[pl.BlockSpec((N_pad, cfg.tk), lambda k: (0, k)),
                          w1_spec] + const_specs,
                out_specs=pl.BlockSpec((N_pad, 1), lambda k: (0, 0)),
                scratch_shapes=[pltpu.VMEM((N_pad, H), jnp.float32)]),
            compiler_params=pltpu.CompilerParams(
                dimension_semantics=("arbitrary",),
                vmem_limit_bytes=cfg.vmem_limit),
            cost_estimate=cost,
        )(x_bf, prep["w1p"], *const_args)
        return out[:N]

    # -------- split path (v7x, 2 TensorCores): partial sums + epilogue --------
    if cfg.w1_transposed:
        w1_spec = pl.BlockSpec((H, cfg.tk), lambda c, k: (0, c * n_k_per + k))
    else:
        w1_spec = pl.BlockSpec((cfg.tk, H), lambda c, k: (c * n_k_per + k, 0))

    cost1 = pl.CostEstimate(
        flops=int(fc1_flops), transcendentals=0,
        bytes_accessed=int(fc1_bytes + cfg.n_split * N_pad * H * 4))

    partial = pl.pallas_call(
        make_fc1_partial_kernel(cfg.w1_transposed),
        out_shape=jax.ShapeDtypeStruct((cfg.n_split, N_pad, H), jnp.float32),
        grid_spec=pltpu.PrefetchScalarGridSpec(
            num_scalar_prefetch=0,
            grid=(cfg.n_split, n_k_per),
            in_specs=[pl.BlockSpec((N_pad, cfg.tk),
                                   lambda c, k: (0, c * n_k_per + k)),
                      w1_spec],
            out_specs=pl.BlockSpec((1, N_pad, H), lambda c, k: (c, 0, 0))),
        compiler_params=pltpu.CompilerParams(
            dimension_semantics=("parallel", "arbitrary"),
            vmem_limit_bytes=cfg.vmem_limit),
        cost_estimate=cost1,
    )(x_bf, prep["w1p"])

    out = pl.pallas_call(
        combine_epilogue_kernel,
        out_shape=jax.ShapeDtypeStruct((N_pad, 1), jnp.float32),
        grid_spec=pltpu.PrefetchScalarGridSpec(
            num_scalar_prefetch=0,
            grid=(1,),
            in_specs=[_full_spec((cfg.n_split, N_pad, H))] + const_specs,
            out_specs=pl.BlockSpec((N_pad, 1), lambda k: (0, 0))),
        compiler_params=pltpu.CompilerParams(
            dimension_semantics=("arbitrary",)),
    )(partial, *const_args)
    return out[:N]


# ----------------------------------------------------------------------------
# pure-JAX reference (matches the kernel's bf16 streaming of x / w1)
# ----------------------------------------------------------------------------
def reference_head(last_hidden_state, params):
    N = last_hidden_state.shape[0]
    x = last_hidden_state.reshape(N, -1)
    x = x.astype(jnp.bfloat16).astype(jnp.float32)
    w1 = params["w1"].astype(jnp.bfloat16).astype(jnp.float32)
    h1 = x @ w1 + params["b1"]
    h1 = _leaky_relu(_layer_norm(h1, params["g1"], params["be1"]))
    h2 = h1 @ params["w2"] + params["b2"]
    h2 = _leaky_relu(_layer_norm(h2, params["g2"], params["be2"]))
    return h2 @ params["w3"] + params["b3"]


def _build_params(key, F, H):
    ks = jax.random.split(key, 6)
    return {
        "w1": jax.random.normal(ks[0], (F, H), jnp.float32) * 0.02,
        "b1": jax.random.normal(ks[1], (1, H), jnp.float32) * 0.02,
        "g1": jnp.ones((1, H), jnp.float32),
        "be1": jnp.zeros((1, H), jnp.float32),
        "w2": jax.random.normal(ks[2], (H, H), jnp.float32) * 0.02,
        "b2": jax.random.normal(ks[3], (1, H), jnp.float32) * 0.02,
        "g2": jnp.ones((1, H), jnp.float32),
        "be2": jnp.zeros((1, H), jnp.float32),
        "w3": jax.random.normal(ks[4], (H, 1), jnp.float32) * 0.02,
        "b3": jax.random.normal(ks[5], (1, 1), jnp.float32) * 0.02,
    }


if __name__ == "__main__":
    # Small shapes consistent with the module's head:
    # batch=2, seq=8 tokens (text+visual), bert_hidden=32 -> flattened F=256
    # (stand-in for the real 153600), hidden_size=32.
    N, SEQ, BERT_H = 2, 8, 32
    F = SEQ * BERT_H

    key = jax.random.PRNGKey(0)
    k_lhs, k_p32, k_p128 = jax.random.split(key, 3)

    # Synthetic backbone output (stands in for VisualBert last_hidden_state).
    last_hidden_state = jax.random.normal(k_lhs, (N, SEQ, BERT_H), jnp.float32)

    # Case 1: hidden_size=32 (< 128 -> transposed lane-dense w1 layout),
    # generation-default TensorCore split.
    params32 = _build_params(k_p32, F, 32)
    prep, cfg = prepare_params(params32)
    out = jax.block_until_ready(visualbert_head(last_hidden_state, prep, cfg))
    ref = reference_head(last_hidden_state, params32)
    assert out.shape == (N, 1)
    assert jnp.allclose(out, ref, atol=2e-3, rtol=2e-3), (out, ref)

    # Case 2: force the 2-TensorCore split path (the v7x layout); it is also
    # correct on 1-TC chips where the "parallel" axis just runs sequentially.
    prep2, cfg2 = prepare_params(params32, n_split=2)
    out2 = jax.block_until_ready(visualbert_head(last_hidden_state, prep2, cfg2))
    assert jnp.allclose(out2, ref, atol=2e-3, rtol=2e-3), (out2, ref)

    # Case 3: hidden_size=128 (multiple of 128 -> natural (F, H) w1 layout).
    params128 = _build_params(k_p128, F, 128)
    prep3, cfg3 = prepare_params(params128)
    out3 = jax.block_until_ready(visualbert_head(last_hidden_state, prep3, cfg3))
    ref3 = reference_head(last_hidden_state, params128)
    assert out3.shape == (N, 1)
    assert jnp.allclose(out3, ref3, atol=2e-3, rtol=2e-3), (out3, ref3)

    print("KERNEL_OK")
</pallas_src>

<mosaic_0001>
module attributes {stable_mosaic.version = 11 : i64} {
  func.func @fused_head_kernel(%arg0: i32, %arg1: memref<16x256xbf16, #tpu.memory_space<vmem>>, %arg2: memref<32x256xbf16, #tpu.memory_space<vmem>>, %arg3: memref<1x32xf32, #tpu.memory_space<vmem>>, %arg4: memref<1x32xf32, #tpu.memory_space<vmem>>, %arg5: memref<1x32xf32, #tpu.memory_space<vmem>>, %arg6: memref<32x32xf32, #tpu.memory_space<vmem>>, %arg7: memref<1x32xf32, #tpu.memory_space<vmem>>, %arg8: memref<1x32xf32, #tpu.memory_space<vmem>>, %arg9: memref<1x32xf32, #tpu.memory_space<vmem>>, %arg10: memref<32x1xf32, #tpu.memory_space<vmem>>, %arg11: memref<1x1xf32, #tpu.memory_space<vmem>>, %arg12: memref<16x1xf32, #tpu.memory_space<vmem>>, %arg13: memref<16x32xf32, #tpu.memory_space<vmem>>) attributes {dimension_semantics = [#tpu.dimension_semantics<arbitrary>], iteration_bounds = array<i64: 1>, scalar_prefetch = 0 : i64, scratch_operands = 1 : i64, tpu.core_type = #tpu.core_type<tc>, window_params = [{transform_indices = @transform_0, window_bounds = array<i64: 16, 256>}, {transform_indices = @transform_1, window_bounds = array<i64: 32, 256>}, {pipeline_mode = #tpu.pipeline_mode<synchronous>, transform_indices = @transform_2, window_bounds = array<i64: 1, 32>}, {pipeline_mode = #tpu.pipeline_mode<synchronous>, transform_indices = @transform_3, window_bounds = array<i64: 1, 32>}, {pipeline_mode = #tpu.pipeline_mode<synchronous>, transform_indices = @transform_4, window_bounds = array<i64: 1, 32>}, {pipeline_mode = #tpu.pipeline_mode<synchronous>, transform_indices = @transform_5, window_bounds = array<i64: 32, 32>}, {pipeline_mode = #tpu.pipeline_mode<synchronous>, transform_indices = @transform_6, window_bounds = array<i64: 1, 32>}, {pipeline_mode = #tpu.pipeline_mode<synchronous>, transform_indices = @transform_7, window_bounds = array<i64: 1, 32>}, {pipeline_mode = #tpu.pipeline_mode<synchronous>, transform_indices = @transform_8, window_bounds = array<i64: 1, 32>}, {pipeline_mode = #tpu.pipeline_mode<synchronous>, transform_indices = @transform_9, window_bounds = array<i64: 32, 1>}, {pipeline_mode = #tpu.pipeline_mode<synchronous>, transform_indices = @transform_10, window_bounds = array<i64: 1, 1>}, {pipeline_mode = #tpu.pipeline_mode<synchronous>, transform_indices = @transform_11, window_bounds = array<i64: 16, 1>}]} {
    %c0_i32 = arith.constant 0 : i32
    %0 = arith.cmpi eq, %arg0, %c0_i32 : i32
    %1 = arith.extui %0 : i1 to i32
    %c0_i32_0 = arith.constant 0 : i32
    %2 = arith.cmpi ne, %1, %c0_i32_0 : i32
    scf.if %2 {
      %cst_10 = arith.constant 0.000000e+00 : f32
      %12 = vector.broadcast %cst_10 : f32 to vector<16x32xf32>
      %c0_11 = arith.constant 0 : index
      %c0_12 = arith.constant 0 : index
      %13 = vector.load %arg13[%c0_11, %c0_12] : memref<16x32xf32, #tpu.memory_space<vmem>>, vector<16x32xf32>
      tpu.vector_store %arg13[%c0_11, %c0_12], %12 {strides = array<i32>} : memref<16x32xf32, #tpu.memory_space<vmem>>, vector<16x32xf32>,
    } else {
    }
    %c0 = arith.constant 0 : index
    %c0_1 = arith.constant 0 : index
    %3 = vector.load %arg13[%c0, %c0_1] : memref<16x32xf32, #tpu.memory_space<vmem>>, vector<16x32xf32>
    %c0_2 = arith.constant 0 : index
    %c0_3 = arith.constant 0 : index
    %4 = vector.load %arg1[%c0_2, %c0_3] : memref<16x256xbf16, #tpu.memory_space<vmem>>, vector<16x256xbf16>
    %c0_4 = arith.constant 0 : index
    %c0_5 = arith.constant 0 : index
    %5 = vector.load %arg2[%c0_4, %c0_5] : memref<32x256xbf16, #tpu.memory_space<vmem>>, vector<32x256xbf16>
    %cst = arith.constant dense<0.000000e+00> : vector<16x32xf32>
    %6 = tpu.matmul %4, %5, %cst {dimension_numbers = #tpu.dot_dimension_numbers<[1], [1], [0], [0], [0, 0, 1, 0], [], []>} : vector<16x256xbf16>, vector<32x256xbf16>, vector<16x32xf32> -> vector<16x32xf32>
    %7 = arith.addf %3, %6 : vector<16x32xf32>
    %c0_6 = arith.constant 0 : index
    %c0_7 = arith.constant 0 : index
    %8 = vector.load %arg13[%c0_6, %c0_7] : memref<16x32xf32, #tpu.memory_space<vmem>>, vector<16x32xf32>
    tpu.vector_store %arg13[%c0_6, %c0_7], %7 {strides = array<i32>} : memref<16x32xf32, #tpu.memory_space<vmem>>, vector<16x32xf32>,
    %c0_i32_8 = arith.constant 0 : i32
    %9 = arith.cmpi eq, %arg0, %c0_i32_8 : i32
    %10 = arith.extui %9 : i1 to i32
    %c0_i32_9 = arith.constant 0 : i32
    %11 = arith.cmpi ne, %10, %c0_i32_9 : i32
    scf.if %11 {
      %c0_10 = arith.constant 0 : index
      %c0_11 = arith.constant 0 : index
      %12 = vector.load %arg13[%c0_10, %c0_11] : memref<16x32xf32, #tpu.memory_space<vmem>>, vector<16x32xf32>
      %c0_12 = arith.constant 0 : index
      %c0_13 = arith.constant 0 : index
      %13 = vector.load %arg3[%c0_12, %c0_13] : memref<1x32xf32, #tpu.memory_space<vmem>>, vector<1x32xf32>
      %c0_14 = arith.constant 0 : index
      %c0_15 = arith.constant 0 : index
      %14 = vector.load %arg4[%c0_14, %c0_15] : memref<1x32xf32, #tpu.memory_space<vmem>>, vector<1x32xf32>
      %c0_16 = arith.constant 0 : index
      %c0_17 = arith.constant 0 : index
      %15 = vector.load %arg5[%c0_16, %c0_17] : memref<1x32xf32, #tpu.memory_space<vmem>>, vector<1x32xf32>
      %c0_18 = arith.constant 0 : index
      %c0_19 = arith.constant 0 : index
      %16 = vector.load %arg6[%c0_18, %c0_19] : memref<32x32xf32, #tpu.memory_space<vmem>>, vector<32x32xf32>
      %c0_20 = arith.constant 0 : index
      %c0_21 = arith.constant 0 : index
      %17 = vector.load %arg7[%c0_20, %c0_21] : memref<1x32xf32, #tpu.memory_space<vmem>>, vector<1x32xf32>
      %c0_22 = arith.constant 0 : index
      %c0_23 = arith.constant 0 : index
      %18 = vector.load %arg8[%c0_22, %c0_23] : memref<1x32xf32, #tpu.memory_space<vmem>>, vector<1x32xf32>
      %c0_24 = arith.constant 0 : index
      %c0_25 = arith.constant 0 : index
      %19 = vector.load %arg9[%c0_24, %c0_25] : memref<1x32xf32, #tpu.memory_space<vmem>>, vector<1x32xf32>
      %c0_26 = arith.constant 0 : index
      %c0_27 = arith.constant 0 : index
      %20 = vector.load %arg10[%c0_26, %c0_27] : memref<32x1xf32, #tpu.memory_space<vmem>>, vector<32x1xf32>
      %c0_28 = arith.constant 0 : index
      %c0_29 = arith.constant 0 : index
      %21 = vector.load %arg11[%c0_28, %c0_29] : memref<1x1xf32, #tpu.memory_space<vmem>>, vector<1x1xf32>
      %22 = vector.broadcast %13 : vector<1x32xf32> to vector<16x32xf32>
      %23 = arith.addf %12, %22 : vector<16x32xf32>
      %cst_30 = arith.constant dense<0.000000e+00> : vector<16xf32>
      %24 = vector.multi_reduction <add>, %23, %cst_30 [1] : vector<16x32xf32> to vector<16xf32>
      %25 = vector.shape_cast %24 : vector<16xf32> to vector<16x1xf32>
      %cst_31 = arith.constant 3.200000e+01 : f32
      %26 = vector.broadcast %cst_31 : f32 to vector<16x1xf32>
      %27 = arith.divf %25, %26 : vector<16x1xf32>
      %28 = vector.broadcast %27 : vector<16x1xf32> to vector<16x32xf32>
      %29 = arith.subf %23, %28 : vector<16x32xf32>
      %30 = arith.mulf %29, %29 : vector<16x32xf32>
      %cst_32 = arith.constant dense<0.000000e+00> : vector<16xf32>
      %31 = vector.multi_reduction <add>, %30, %cst_32 [1] : vector<16x32xf32> to vector<16xf32>
      %32 = vector.shape_cast %31 : vector<16xf32> to vector<16x1xf32>
      %cst_33 = arith.constant 3.200000e+01 : f32
      %33 = vector.broadcast %cst_33 : f32 to vector<16x1xf32>
      %34 = arith.divf %32, %33 : vector<16x1xf32>
      %35 = vector.broadcast %27 : vector<16x1xf32> to vector<16x32xf32>
      %36 = arith.subf %23, %35 : vector<16x32xf32>
      %cst_34 = arith.constant 9.99999974E-6 : f32
      %37 = vector.broadcast %cst_34 : f32 to vector<16x1xf32>
      %38 = arith.addf %34, %37 : vector<16x1xf32>
      %39 = math.rsqrt %38 : vector<16x1xf32>
      %40 = vector.broadcast %39 : vector<16x1xf32> to vector<16x32xf32>
      %41 = arith.mulf %36, %40 : vector<16x32xf32>
      %42 = vector.broadcast %14 : vector<1x32xf32> to vector<16x32xf32>
      %43 = arith.mulf %41, %42 : vector<16x32xf32>
      %44 = vector.broadcast %15 : vector<1x32xf32> to vector<16x32xf32>
      %45 = arith.addf %43, %44 : vector<16x32xf32>
      %cst_35 = arith.constant 0.000000e+00 : f32
      %46 = vector.broadcast %cst_35 : f32 to vector<16x32xf32>
      %47 = arith.cmpf ogt, %45, %46 : vector<16x32xf32>
      %cst_36 = arith.constant 0.00999999977 : f32
      %48 = vector.broadcast %cst_36 : f32 to vector<16x32xf32>
      %49 = arith.mulf %48, %45 : vector<16x32xf32>
      %50 = arith.select %47, %45, %49 : vector<16x32xi1>, vector<16x32xf32>
      %cst_37 = arith.constant dense<0.000000e+00> : vector<16x32xf32>
      %51 = tpu.matmul %50, %16, %cst_37 {dimension_numbers = #tpu.dot_dimension_numbers<[1], [0], [0], [1], [0, 0, 1, 1], [], []>} : vector<16x32xf32>, vector<32x32xf32>, vector<16x32xf32> -> vector<16x32xf32>
      %52 = vector.broadcast %17 : vector<1x32xf32> to vector<16x32xf32>
      %53 = arith.addf %51, %52 : vector<16x32xf32>
      %cst_38 = arith.constant dense<0.000000e+00> : vector<16xf32>
      %54 = vector.multi_reduction <add>, %53, %cst_38 [1] : vector<16x32xf32> to vector<16xf32>
      %55 = vector.shape_cast %54 : vector<16xf32> to vector<16x1xf32>
      %cst_39 = arith.constant 3.200000e+01 : f32
      %56 = vector.broadcast %cst_39 : f32 to vector<16x1xf32>
      %57 = arith.divf %55, %56 : vector<16x1xf32>
      %58 = vector.broadcast %57 : vector<16x1xf32> to vector<16x32xf32>
      %59 = arith.subf %53, %58 : vector<16x32xf32>
      %60 = arith.mulf %59, %59 : vector<16x32xf32>
      %cst_40 = arith.constant dense<0.000000e+00> : vector<16xf32>
      %61 = vector.multi_reduction <add>, %60, %cst_40 [1] : vector<16x32xf32> to vector<16xf32>
      %62 = vector.shape_cast %61 : vector<16xf32> to vector<16x1xf32>
      %cst_41 = arith.constant 3.200000e+01 : f32
      %63 = vector.broadcast %cst_41 : f32 to vector<16x1xf32>
      %64 = arith.divf %62, %63 : vector<16x1xf32>
      %65 = vector.broadcast %57 : vector<16x1xf32> to vector<16x32xf32>
      %66 = arith.subf %53, %65 : vector<16x32xf32>
      %cst_42 = arith.constant 9.99999974E-6 : f32
      %67 = vector.broadcast %cst_42 : f32 to vector<16x1xf32>
      %68 = arith.addf %64, %67 : vector<16x1xf32>
      %69 = math.rsqrt %68 : vector<16x1xf32>
      %70 = vector.broadcast %69 : vector<16x1xf32> to vector<16x32xf32>
      %71 = arith.mulf %66, %70 : vector<16x32xf32>
      %72 = vector.broadcast %18 : vector<1x32xf32> to vector<16x32xf32>
      %73 = arith.mulf %71, %72 : vector<16x32xf32>
      %74 = vector.broadcast %19 : vector<1x32xf32> to vector<16x32xf32>
      %75 = arith.addf %73, %74 : vector<16x32xf32>
      %cst_43 = arith.constant 0.000000e+00 : f32
      %76 = vector.broadcast %cst_43 : f32 to vector<16x32xf32>
      %77 = arith.cmpf ogt, %75, %76 : vector<16x32xf32>
      %cst_44 = arith.constant 0.00999999977 : f32
      %78 = vector.broadcast %cst_44 : f32 to vector<16x32xf32>
      %79 = arith.mulf %78, %75 : vector<16x32xf32>
      %80 = arith.select %77, %75, %79 : vector<16x32xi1>, vector<16x32xf32>
      %cst_45 = arith.constant dense<0.000000e+00> : vector<16x1xf32>
      %81 = tpu.matmul %80, %20, %cst_45 {dimension_numbers = #tpu.dot_dimension_numbers<[1], [0], [0], [1], [0, 0, 1, 1], [], []>} : vector<16x32xf32>, vector<32x1xf32>, vector<16x1xf32> -> vector<16x1xf32>
      %82 = vector.broadcast %21 : vector<1x1xf32> to vector<16x1xf32>
      %83 = arith.addf %81, %82 : vector<16x1xf32>
      %c0_46 = arith.constant 0 : index
      %c0_47 = arith.constant 0 : index
      %84 = vector.load %arg12[%c0_46, %c0_47] : memref<16x1xf32, #tpu.memory_space<vmem>>, vector<16x1xf32>
      tpu.vector_store %arg12[%c0_46, %c0_47], %83 {strides = array<i32>} : memref<16x1xf32, #tpu.memory_space<vmem>>, vector<16x1xf32>,
    } else {
    }
    return
  }
  func.func @transform_0(%arg0: i32) -> (i32, i32) {
    %c0_i32 = arith.constant 0 : i32
    %c0_i32_0 = arith.constant 0 : i32
    return %c0_i32, %arg0 : i32, i32
  }
  func.func @transform_1(%arg0: i32) -> (i32, i32) {
    %c0_i32 = arith.constant 0 : i32
    %c0_i32_0 = arith.constant 0 : i32
    return %c0_i32, %arg0 : i32, i32
  }
  func.func @transform_2(%arg0: i32) -> (i32, i32) {
    %c0_i32 = arith.constant 0 : i32
    %c0_i32_0 = arith.constant 0 : i32
    %c0_i32_1 = arith.constant 0 : i32
    return %c0_i32, %c0_i32_0 : i32, i32
  }
  func.func @transform_3(%arg0: i32) -> (i32, i32) {
    %c0_i32 = arith.constant 0 : i32
    %c0_i32_0 = arith.constant 0 : i32
    %c0_i32_1 = arith.constant 0 : i32
    return %c0_i32, %c0_i32_0 : i32, i32
  }
  func.func @transform_4(%arg0: i32) -> (i32, i32) {
    %c0_i32 = arith.constant 0 : i32
    %c0_i32_0 = arith.constant 0 : i32
    %c0_i32_1 = arith.constant 0 : i32
    return %c0_i32, %c0_i32_0 : i32, i32
  }
  func.func @transform_5(%arg0: i32) -> (i32, i32) {
    %c0_i32 = arith.constant 0 : i32
    %c0_i32_0 = arith.constant 0 : i32
    %c0_i32_1 = arith.constant 0 : i32
    return %c0_i32, %c0_i32_0 : i32, i32
  }
  func.func @transform_6(%arg0: i32) -> (i32, i32) {
    %c0_i32 = arith.constant 0 : i32
    %c0_i32_0 = arith.constant 0 : i32
    %c0_i32_1 = arith.constant 0 : i32
    return %c0_i32, %c0_i32_0 : i32, i32
  }
  func.func @transform_7(%arg0: i32) -> (i32, i32) {
    %c0_i32 = arith.constant 0 : i32
    %c0_i32_0 = arith.constant 0 : i32
    %c0_i32_1 = arith.constant 0 : i32
    return %c0_i32, %c0_i32_0 : i32, i32
  }
  func.func @transform_8(%arg0: i32) -> (i32, i32) {
    %c0_i32 = arith.constant 0 : i32
    %c0_i32_0 = arith.constant 0 : i32
    %c0_i32_1 = arith.constant 0 : i32
    return %c0_i32, %c0_i32_0 : i32, i32
  }
  func.func @transform_9(%arg0: i32) -> (i32, i32) {
    %c0_i32 = arith.constant 0 : i32
    %c0_i32_0 = arith.constant 0 : i32
    %c0_i32_1 = arith.constant 0 : i32
    return %c0_i32, %c0_i32_0 : i32, i32
  }
  func.func @transform_10(%arg0: i32) -> (i32, i32) {
    %c0_i32 = arith.constant 0 : i32
    %c0_i32_0 = arith.constant 0 : i32
    %c0_i32_1 = arith.constant 0 : i32
    return %c0_i32, %c0_i32_0 : i32, i32
  }
  func.func @transform_11(%arg0: i32) -> (i32, i32) {
    %c0_i32 = arith.constant 0 : i32
    %c0_i32_0 = arith.constant 0 : i32
    %c0_i32_1 = arith.constant 0 : i32
    return %c0_i32, %c0_i32_0 : i32, i32
  }
}

</mosaic_0001>

<bundles_post_ra>
// kernel: visualbert_head.1
= control target key start
LH: loop header
LB: loop body
LE: loop exit
PB: predicated region body
PF: predicated region fallthrough
CT: control target
= control target key end

     0   :  { %vm45_vm0 = vcmask 261120   ;;  %v507_v1 = vmov 0.0   ;;  %vm431_vm5 = vcmask 7168   ;;  %s653_s1 = inlined_call_operand.vmem [shape: bf16[32,256], index: 1, kind: input, shape index: {}]   ;;  %s654_s0 = inlined_call_operand.vmem [shape: bf16[16,256], index: 0, kind: input, shape index: {}]   ;;  %s655_s2 = inlined_call_operand.vmem [shape: f32[1,32], index: 2, kind: input, shape index: {}]   ;;  %s656_s5 = inlined_call_operand.vmem [shape: f32[32,32], index: 5, kind: input, shape index: {}]   ;;  %s657_s3 = inlined_call_operand.vmem [shape: f32[1,32], index: 3, kind: input, shape index: {}]   ;;  %s658_s4 = inlined_call_operand.vmem [shape: f32[1,32], index: 4, kind: input, shape index: {}]   ;;  %s659_s6 = inlined_call_operand.vmem [shape: f32[1,32], index: 6, kind: input, shape index: {}]   ;;  %s660_s9 = inlined_call_operand.vmem [shape: f32[32,1], index: 9, kind: input, shape index: {}]   ;;  %s661_s10 = inlined_call_operand.<no memory space> [shape: f32[1,1], index: 10, kind: input, shape index: {}]   ;;  %s662_s7 = inlined_call_operand.vmem [shape: f32[1,32], index: 7, kind: input, shape index: {}]   ;;  %s663_s8 = inlined_call_operand.vmem [shape: f32[1,32], index: 8, kind: input, shape index: {}]   ;;  %s664_s11 = inlined_call_operand.vmem [shape: f32[16,1], index: 11, kind: output, shape index: {}]  }
   0x1   :  { %v490_v0 = vld [vmem:[%s653_s1 + $0x14] ss:$8 sps:$4 sm:$0xff]   ;;  %46 = vst.msk [vmem:[#allocation2] sm:$0xff] %vm45_vm0, %v507_v1  ;;  %47 = vst.msk [vmem:[#allocation2 + $0x8] sm:$0xff] %vm45_vm0, %v507_v1  ;;  %v492_v2 = vld [vmem:[%s653_s1 + $0x10] ss:$8 sps:$4 sm:$0xff]  }
   0x2   :  { %98 = vmatprep.subr.bf16.mxu0 %v490_v0  ;;  %v493_v3 = vld [vmem:[%s653_s1 + $0x4] ss:$8 sps:$4 sm:$0xff]   ;;  %v495_v5 = vld [vmem:[%s653_s1] ss:$8 sps:$4 sm:$0xff]   ;;  %v143_v32 = vld [vmem:[%s656_s5 + $0x18] sm:$0xff] }
   0x3   :  { %99 = vmatpush1.bf16.xpose.msra.mxu0 %v492_v2  ;;  %v498_v4 = vld [vmem:[%s654_s0 + $0x4] ss:$8 sps:$4 sm:$0xff]   ;;  %v496_v6 = vld [vmem:[%s654_s0] ss:$8 sps:$4 sm:$0xff]   ;;  %v142_v33 = vld [vmem:[%s656_s5 + $0x10] sm:$0xff]  ;;  %467 = vmatprep.subr.mxu1 %v143_v32 }
   0x4   :  { %100 = vmatprep.subr.bf16.mxu0 %v493_v3  ;;  %118 = vmatprep.mubr.bf16.mxu0 %v498_v4  ;;  %v444_v15 = vld [vmem:[%s655_s2] ss:$0 sm:$0xff]  ;;  %v141_v34 = vld [vmem:[%s656_s5 + $0x8] sm:$0xff] }
   0x5   :  { %468 = vmatpush3.msra.mxu1 %v143_v32  ;;  %v140_v35 = vld [vmem:[%s656_s5] sm:$0xff] }
   0x6   :  { %469 = vmatprep.subr.mxu1 %v142_v33  ;;  %v445_v43 = vld [vmem:[%s657_s3] ss:$0 sm:$0xff] }
   0x7   :  { %470 = vmatpush3.msra.mxu1 %v142_v33  ;;  %v446_v45 = vld [vmem:[%s658_s4] ss:$0 sm:$0xff] }
   0x8   :  { %v48_v7 = vld [vmem:[#allocation2] sm:$0xff]  ;;  %v49_v11 = vld [vmem:[#allocation2 + $0x8] sm:$0xff]  ;;  %471 = vmatprep.subr.mxu1 %v141_v34 }
   0x9   :  { %472 = vmatpush3.msra.mxu1 %v141_v34  ;;  %v447_v56 = vld [vmem:[%s659_s6] ss:$0 sm:$0xff] }
   0xa   :  { %473 = vmatprep.subr.mxu1 %v140_v35 }
   0xb   :  { %101 = vmatpush1.bf16.xpose.msra.mxu0 %v495_v5  ;;  %474 = vmatpush3.msra.mxu1 %v140_v35 }
  0x12   :  { %119 = vmatmul.mubr.bf16.vlgmr.msra.gmra.mxu0 %v496_v6 }
  0xd2   :  { %v120_v8 = vpop.f32.mrf.mxu0 }
  0xd3   :  { %v127_v9 = vadd.f32 %v120_v8, %v48_v7 }
  0xd4   :  { %v122_v10 = vpop.f32.mrf.mxu0 }
  0xd5   :  { %130 = vst.msk [vmem:[#allocation2] sm:$0xff] %vm45_vm0, %v127_v9  ;;  %v150_v9 = vld [vmem:[%s660_s9 + $0x18] sm:$0xff]  ;;  %v149_v10 = vld [vmem:[%s660_s9 + $0x10] sm:$0xff] }
  0xd6   :  { %v123_v12 = vpop.f32.mrf.mxu0  ;;  %478 = vmatprep.subr.mxu1 %v150_v9 }
  0xd7   :  { %v128_v13 = vadd.f32 %v123_v12, %v49_v11  ;;  %v148_v11 = vld [vmem:[%s660_s9 + $0x8] sm:$0xff]  ;;  %v147_v12 = vld [vmem:[%s660_s9] sm:$0xff] }
  0xd8   :  { %v125_v14 = vpop.f32.mrf.mxu0 }
  0xd9   :  { %131 = vst.msk [vmem:[#allocation2 + $0x8] sm:$0xff] %vm45_vm0, %v128_v13  ;;  %v16_v13 = vstv %s661_s10 }
  0xda   :  { %17 = vst [vmem:[#allocation3] sm:$0x1] %v16_v13 }
  0xdc   :  { %v135_v16 = vld [vmem:[#allocation2] sm:$0xff] }
  0xdd   :  { %v158_v17 = vadd.f32 %v444_v15, %v135_v16 }
  0xdf   :  { %v160_v18 = vsel %vm45_vm0, %v158_v17, 0.0 }
  0xe0   :  { %161 = vadd.xlane.f32.xlu0 %v160_v18  ;;  %v136_v19 = vld [vmem:[#allocation2 + $0x8] sm:$0xff] }
  0xe1   :  { %v159_v20 = vadd.f32 %v444_v15, %v136_v19  ;;  %v452_v34 = vld [vmem:[#allocation3] ss:$0 sm:$0xff] }
  0xe3   :  { %v163_v21 = vsel %vm45_vm0, %v159_v20, 0.0 }
  0xe4   :  { %164 = vadd.xlane.f32.xlu0 %v163_v21  ;;  %v450_v21 = vld [vmem:[%s662_s7] ss:$0 sm:$0xff] }
 0x169   :  { %v162_v22 = vpop.xlane.xlu0 %161 }
 0x16a   :  { %v167_v23 = vmul.f32 0.03125, %v162_v22 }
 0x16c   :  { %v169_v24 = vsub.f32 %v158_v17, %v167_v23 }
 0x16d   :  { %v165_v25 = vpop.xlane.xlu0 %164 }
 0x16e   :  { %v168_v26 = vmul.f32 0.03125, %v165_v25  ;;  %v171_v27 = vmul.f32 %v169_v24, %v169_v24 }
 0x170   :  { %v170_v28 = vsub.f32 %v159_v20, %v168_v26  ;;  %v173_v29 = vsel %vm45_vm0, %v171_v27, 0.0 }
 0x171   :  { %174 = vadd.xlane.f32.xlu1 %v173_v29 }
 0x172   :  { %v172_v30 = vmul.f32 %v170_v28, %v170_v28 }
 0x174   :  { %v176_v31 = vsel %vm45_vm0, %v172_v30, 0.0 }
 0x175   :  { %177 = vadd.xlane.f32.xlu1 %v176_v31 }
 0x1fa   :  { %v175_v36 = vpop.xlane.xlu1 %174 }
 0x1fb   :  { %v179_v37 = vmul.f32 0.03125, %v175_v36 }
 0x1fd   :  { %v181_v38 = vadd.f32 1e-05, %v179_v37 }
 0x1fe   :  { %v178_v39 = vpop.xlane.xlu1 %177 }
 0x1ff   :  { %499 = vrsqrt.f32 %v181_v38  ;;  %v180_v40 = vmul.f32 0.03125, %v178_v39 }
 0x201   :  { %v182_v41 = vadd.f32 1e-05, %v180_v40 }
 0x203   :  { %501 = vrsqrt.f32 %v182_v41 }
 0x20c   :  { %v500_v42 = vpop.eup %499 }
 0x20d   :  { %v185_v44 = vmul.f32 %v500_v42, %v169_v24  ;;  %v451_v24 = vld [vmem:[%s663_s8] ss:$0 sm:$0xff] }
 0x20f   :  { %v193_v46 = vmul.f32 %v445_v43, %v185_v44 }
 0x210   :  { %v502_v47 = vpop.eup %501 }
 0x211   :  { %v186_v48 = vmul.f32 %v502_v47, %v170_v28  ;;  %v201_v49 = vadd.f32 %v446_v45, %v193_v46 }
 0x213   :  { %v194_v50 = vmul.f32 %v445_v43, %v186_v48  ;;  %vm203_vm1 = vcmp.gt.f32.partialorder %v201_v49, 0.0  ;;  %v205_v51 = vmul.f32 0.01, %v201_v49 }
 0x215   :  { %v202_v52 = vadd.f32 %v446_v45, %v194_v50  ;;  %v207_v53 = vsel %vm203_vm1, %v201_v49, %v205_v51 }
 0x216   :  { %475 = vmatprep.mubr.msk.f32.mxu1 %vm45_vm0, %v207_v53 }
 0x217   :  { %vm204_vm2 = vcmp.gt.f32.partialorder %v202_v52, 0.0  ;;  %v206_v54 = vmul.f32 0.01, %v202_v52 }
 0x219   :  { %v208_v55 = vsel %vm204_vm2, %v202_v52, %v206_v54 }
 0x21a   :  { %476 = vmatmul.mubr.msk.f32.vlgmr.msra.gmra.mxu1 %vm45_vm0, %v208_v55 }
 0x21b   :  { %479 = vmatpush3.msra.mxu1 %v150_v9 }
 0x21c   :  { %480 = vmatprep.subr.mxu1 %v149_v10 }
 0x21d   :  { %481 = vmatpush3.msra.mxu1 %v149_v10 }
 0x21e   :  { %482 = vmatprep.subr.mxu1 %v148_v11 }
 0x21f   :  { %483 = vmatpush3.msra.mxu1 %v148_v11 }
 0x220   :  { %484 = vmatprep.subr.mxu1 %v147_v12 }
 0x221   :  { %485 = vmatpush3.msra.mxu1 %v147_v12 }
 0x2da   :  { %v477_v57 = vpop.f32.mrf.mxu1 }
 0x2db   :  { %v293_v58 = vadd.f32 %v477_v57, %v447_v56 }
 0x2dc   :  { %v287_v59 = vpop.f32.mrf.mxu1 }
 0x2dd   :  { %v288_v60 = vadd.f32 %v447_v56, %v287_v59  ;;  %v299_v61 = vsel %vm45_vm0, %v293_v58, 0.0 }
 0x2de   :  { %300 = vadd.xlane.f32.xlu1 %v299_v61 }
 0x2df   :  { %v296_v62 = vsel %vm45_vm0, %v288_v60, 0.0 }
 0x2e0   :  { %297 = vadd.xlane.f32.xlu0 %v296_v62 }
 0x367   :  { %v301_v63 = vpop.xlane.xlu1 %300 }
 0x368   :  { %v303_v0 = vmul.f32 0.03125, %v301_v63 }
 0x369   :  { %v298_v1 = vpop.xlane.xlu0 %297 }
 0x36a   :  { %v305_v2 = vsub.f32 %v293_v58, %v303_v0  ;;  %v302_v3 = vmul.f32 0.03125, %v298_v1 }
 0x36c   :  { %v304_v4 = vsub.f32 %v288_v60, %v302_v3  ;;  %v307_v5 = vmul.f32 %v305_v2, %v305_v2 }
 0x36e   :  { %v311_v6 = vsel %vm45_vm0, %v307_v5, 0.0  ;;  %v306_v7 = vmul.f32 %v304_v4, %v304_v4 }
 0x36f   :  { %312 = vadd.xlane.f32.xlu1 %v311_v6 }
 0x370   :  { %v308_v8 = vsel %vm45_vm0, %v306_v7, 0.0 }
 0x371   :  { %309 = vadd.xlane.f32.xlu0 %v308_v8 }
 0x3f8   :  { %v313_v14 = vpop.xlane.xlu1 %312 }
 0x3f9   :  { %v315_v15 = vmul.f32 0.03125, %v313_v14 }
 0x3fa   :  { %v310_v16 = vpop.xlane.xlu0 %309 }
 0x3fb   :  { %v317_v17 = vadd.f32 1e-05, %v315_v15  ;;  %v314_v18 = vmul.f32 0.03125, %v310_v16 }
 0x3fd   :  { %503 = vrsqrt.f32 %v317_v17  ;;  %v316_v19 = vadd.f32 1e-05, %v314_v18 }
 0x3ff   :  { %505 = vrsqrt.f32 %v316_v19 }
 0x40a   :  { %v504_v20 = vpop.eup %503 }
 0x40b   :  { %v321_v22 = vmul.f32 %v504_v20, %v305_v2 }
 0x40c   :  { %v506_v23 = vpop.eup %505 }
 0x40d   :  { %v320_v25 = vmul.f32 %v506_v23, %v304_v4  ;;  %v329_v26 = vmul.f32 %v450_v21, %v321_v22 }
 0x40f   :  { %v328_v27 = vmul.f32 %v450_v21, %v320_v25  ;;  %v337_v28 = vadd.f32 %v451_v24, %v329_v26 }
 0x411   :  { %v336_v29 = vadd.f32 %v451_v24, %v328_v27  ;;  %v341_v30 = vmul.f32 0.01, %v337_v28  ;;  %vm339_vm4 = vcmp.gt.f32.partialorder %v337_v28, 0.0 }
 0x413   :  { %vm338_vm3 = vcmp.gt.f32.partialorder %v336_v29, 0.0  ;;  %v340_v31 = vmul.f32 0.01, %v336_v29  ;;  %v343_v33 = vsel %vm339_vm4, %v337_v28, %v341_v30 }
 0x415   :  { %v342_v32 = vsel %vm338_vm3, %v336_v29, %v340_v31 }
 0x416   :  { %486 = vmatprep.mubr.msk.f32.mxu1 %vm45_vm0, %v342_v32 }
 0x417   :  { %487 = vmatmul.mubr.msk.f32.vlgmr.msra.gmra.mxu1 %vm45_vm0, %v343_v33 }
 0x4d7   :  { %v488_v35 = vpop.f32.mrf.mxu1 }
 0x4d8   :  { %v428_v36 = vadd.f32 %v488_v35, %v452_v34 }
 0x4d9   :  { %v422_v37 = vpop.f32.mrf.mxu1 }
 0x4da   :  { %433 = vst.msk [vmem:[%s664_s11 + $0x8] sm:$0xff] %vm431_vm5, %v428_v36  ;;  %v423_v38 = vadd.f32 %v452_v34, %v422_v37 }
 0x4dc   :  { %432 = vst.msk [vmem:[%s664_s11] sm:$0xff] %vm431_vm5, %v423_v38 }

</bundles_post_ra>
